<compile_context>
chip_gen: v7x
topology: tpu7x:2x2x1
jax: 0.10.0
libtpu: 0.0.40
codegen_flags: <defaults>
</compile_context>

<pallas_src>
import functools

import jax
import jax.numpy as jnp
from jax.experimental import pallas as pl
from jax.experimental.pallas import tpu as pltpu


_LANES = 1024                      # lane-dense last dim (multiple of 128)
_TILE_BYTES = 2 * 1024 * 1024      # ~2 MiB per buffer per grid step
_KERNEL_MIN_ELEMS = 1 << 20        # below this, kernel overhead > copy cost


def _identity_kernel(x_ref, o_ref):
    # Whole-tile elementwise copy (identity forward); pure vld/vst.
    o_ref[...] = x_ref[...]


@functools.partial(jax.jit, static_argnames=())
def _identity_copy_pallas(x: jax.Array) -> jax.Array:
    """Identity copy of `x` through a lane-dense, big-tile Pallas kernel."""
    orig_shape = x.shape
    total = x.size
    itemsize = jnp.dtype(x.dtype).itemsize

    # Rows per grid step: ~2 MiB / buffer, rounded to a multiple of 32 so the
    # second-to-last dim stays aligned to packed sublanes (bf16=16, int8=32).
    target_rows = max(32, (_TILE_BYTES // (_LANES * itemsize)) // 32 * 32)

    # Pad the flat length up to a whole number of lane-dense rows.
    padded_total = -(-total // _LANES) * _LANES
    rows = padded_total // _LANES
    if rows <= target_rows:
        tile_rows = rows                      # single step, full-extent block
    else:
        tile_rows = target_rows
        rows = -(-rows // tile_rows) * tile_rows   # make grid divide evenly
        padded_total = rows * _LANES

    x_flat = x.reshape(-1)
    if padded_total != total:
        x_flat = jnp.pad(x_flat, (0, padded_total - total))
    x2d = x_flat.reshape(rows, _LANES)

    grid = rows // tile_rows

    out = pl.pallas_call(
        _identity_kernel,
        out_shape=jax.ShapeDtypeStruct((rows, _LANES), x.dtype),
        grid_spec=pltpu.PrefetchScalarGridSpec(
            num_scalar_prefetch=0,
            grid=(grid,),
            in_specs=[pl.BlockSpec((tile_rows, _LANES), lambda i: (i, 0))],
            out_specs=pl.BlockSpec((tile_rows, _LANES), lambda i: (i, 0)),
        ),
        # Identity: output may reuse the input buffer (halves HBM footprint).
        input_output_aliases={0: 0},
        compiler_params=pltpu.CompilerParams(
            dimension_semantics=("parallel",),   # lets v7x's 2 TCs split the copy
        ),
    )(x2d)

    out_flat = out.reshape(-1)
    if padded_total != total:
        out_flat = out_flat[:total]
    return out_flat.reshape(orig_shape)


def base_model_forward(x: jax.Array, *, use_kernel: bool | None = None) -> jax.Array:
    """Identity forward of the abstract BaseModel.

    For large tensors the copy runs through a lane-dense Pallas kernel; for
    small tensors (where per-step grid overhead dominates an op with zero
    compute) it returns `x` directly unless `use_kernel=True` is forced.
    """
    if x.size == 0:
        return x
    if use_kernel is None:
        use_kernel = x.size >= _KERNEL_MIN_ELEMS
    if not use_kernel:
        # Identity with no compute: let XLA elide the copy entirely.
        return x
    return _identity_copy_pallas(x)


class BaseModelJax:
    """JAX/Pallas analogue of the abstract PyTorch BaseModel."""

    def __init__(self):
        # Abstract base: no parameters are registered in the PyTorch module.
        pass

    def forward(self, x, *args, use_kernel=None, **kwargs):
        # Abstract in PyTorch; concrete identity pass-through here.
        return base_model_forward(x, use_kernel=use_kernel)

    # The remaining abstract / no-op methods, mirrored for completeness.
    def load(self, ckpt_path):            # abstract — no checkpoint IO
        raise NotImplementedError

    def save(self, which_epoch):          # abstract
        raise NotImplementedError

    def update(self, *args, **kwargs):    # abstract
        raise NotImplementedError

    def write_train_summary(self, update_return):  # no-op in source
        pass

    def step_scheduler(self):             # no-op in source
        pass

    def get_lr(self):                     # no-op in source
        pass


if __name__ == "__main__":
    key = jax.random.PRNGKey(0)
    model = BaseModelJax()

    # Small NCHW input consistent with a typical vision forward signature.
    x = jax.random.normal(key, (2, 4, 16, 16), dtype=jnp.float32)

    # Force the Pallas path to exercise the kernel (default would bypass it
    # for an input this small).
    y = model.forward(x, use_kernel=True)
    y = jax.block_until_ready(y)
    assert y.shape == x.shape and y.dtype == x.dtype
    assert bool(jnp.all(y == x))

    # Exercise the padding/slice path (total elements not a multiple of 1024).
    x2 = jax.random.normal(key, (2, 3, 16, 20), dtype=jnp.float32)
    y2 = jax.block_until_ready(model.forward(x2, use_kernel=True))
    assert y2.shape == x2.shape and bool(jnp.all(y2 == x2))

    # Default (no-kernel) fast path for small inputs.
    y3 = model.forward(x)
    assert bool(jnp.all(y3 == x))

    print("KERNEL_OK")
</pallas_src>

<mosaic_0001>
module attributes {stable_mosaic.version = 11 : i64} {
  func.func @_identity_kernel(%arg0: i32, %arg1: memref<2x1024xf32, #tpu.memory_space<vmem>>, %arg2: memref<2x1024xf32, #tpu.memory_space<vmem>>) attributes {dimension_semantics = [#tpu.dimension_semantics<parallel>], iteration_bounds = array<i64: 1>, scalar_prefetch = 0 : i64, scratch_operands = 0 : i64, tpu.core_type = #tpu.core_type<tc>, window_params = [{transform_indices = @transform_0, window_bounds = array<i64: 2, 1024>}, {transform_indices = @transform_1, window_bounds = array<i64: 2, 1024>}]} {
    %c0 = arith.constant 0 : index
    %c0_0 = arith.constant 0 : index
    %0 = vector.load %arg1[%c0, %c0_0] : memref<2x1024xf32, #tpu.memory_space<vmem>>, vector<2x1024xf32>
    %c0_1 = arith.constant 0 : index
    %c0_2 = arith.constant 0 : index
    %1 = vector.load %arg2[%c0_1, %c0_2] : memref<2x1024xf32, #tpu.memory_space<vmem>>, vector<2x1024xf32>
    tpu.vector_store %arg2[%c0_1, %c0_2], %0 {strides = array<i32>} : memref<2x1024xf32, #tpu.memory_space<vmem>>, vector<2x1024xf32>,
    return
  }
  func.func @transform_0(%arg0: i32) -> (i32, i32) {
    %c0_i32 = arith.constant 0 : i32
    %c0_i32_0 = arith.constant 0 : i32
    return %arg0, %c0_i32 : i32, i32
  }
  func.func @transform_1(%arg0: i32) -> (i32, i32) {
    %c0_i32 = arith.constant 0 : i32
    %c0_i32_0 = arith.constant 0 : i32
    return %arg0, %c0_i32 : i32, i32
  }
}

</mosaic_0001>

<bundles_post_ra>
// kernel: _identity_copy_pallas.1
= control target key start
LH: loop header
LB: loop body
LE: loop exit
PB: predicated region body
PF: predicated region fallthrough
CT: control target
= control target key end

     0   :  { %s38_s0 = inlined_call_operand.vmem [shape: f32[2,1024], index: 0, kind: input, shape index: {}, may-alias: {0,1}]   ;;  %s39_s1 = inlined_call_operand.vmem [shape: f32[2,1024], index: 1, kind: output, shape index: {}, may-alias: {0,1}]  }
   0x1   :  { %v8_v0 = vld [vmem:[%s38_s0] sm:$0xff]  ;;  %v9_v1 = vld [vmem:[%s38_s0 + $0x8] sm:$0xff] }
   0x2   :  { %10 = vst [vmem:[%s39_s1] sm:$0xff] %v8_v0  ;;  %11 = vst [vmem:[%s39_s1 + $0x8] sm:$0xff] %v9_v1 }

</bundles_post_ra>
